<compile_context>
chip_gen: v7x
topology: tpu7x:2x2x1
jax: 0.10.0
libtpu: 0.0.40
codegen_flags: <defaults>
</compile_context>

<pallas_src>
import functools

import jax
import jax.numpy as jnp
from jax.experimental import pallas as pl
from jax.experimental.pallas import tpu as pltpu


# ---------------------------------------------------------------------------
# Random parameters + source-index map (plain JAX, O(HW), computed once).
# ---------------------------------------------------------------------------
def _sample_params(key, degrees, p_vflip, p_hflip):
    k_rot, k_v, k_h = jax.random.split(key, 3)
    angle = jax.random.uniform(k_rot, (), minval=-degrees, maxval=degrees)
    angle = angle * (jnp.pi / 180.0)
    vflip = jax.random.uniform(k_v, ()) < p_vflip
    hflip = jax.random.uniform(k_h, ()) < p_hflip
    return angle, vflip, hflip


def _source_index_map(angle, vflip, hflip, H, W):
    """Flat int32 source index per output pixel; -1 => fill with 0.

    output = HFlip(VFlip(Rotate(input))): fold the flips into the output
    coordinates first, then apply the inverse rotation about the pixel center
    ((W-1)/2, (H-1)/2) with nearest-neighbor sampling (matches torchvision
    F.rotate on tensors: nearest, expand=False, fill=0, align_corners=False;
    exact-.5 tie handling may differ).
    """
    HW = H * W
    p = jnp.arange(HW, dtype=jnp.int32)
    oy = p // W
    ox = p % W
    oy = jnp.where(vflip, (H - 1) - oy, oy)
    ox = jnp.where(hflip, (W - 1) - ox, ox)
    oyf = oy.astype(jnp.float32)
    oxf = ox.astype(jnp.float32)
    cx = (W - 1) * 0.5
    cy = (H - 1) * 0.5
    cos_a = jnp.cos(angle)
    sin_a = jnp.sin(angle)
    sx = (oxf - cx) * cos_a - (oyf - cy) * sin_a + cx
    sy = (oxf - cx) * sin_a + (oyf - cy) * cos_a + cy
    sxr = jnp.floor(sx + 0.5)
    syr = jnp.floor(sy + 0.5)
    valid = (sxr >= 0) & (sxr <= W - 1) & (syr >= 0) & (syr <= H - 1)
    src = jnp.where(valid,
                    syr.astype(jnp.int32) * W + sxr.astype(jnp.int32),
                    jnp.int32(-1))
    return src                                   # (HW,) int32


# ---------------------------------------------------------------------------
# Pallas kernel: tiled one-hot gather on the MXU.
# ---------------------------------------------------------------------------
def _gather_kernel(qlo_ref, qhi_ref, src_ref, x_ref, o_ref, acc_ref,
                   *, TQ, TP, compute_dtype):
    """out[nc, p] = x[nc, src[p]] (0 when src[p] < 0), accumulated over Q tiles.

    qlo_ref/qhi_ref: SMEM int32[n_p]   inclusive Q-block range contributing to
                                       P block i (lo > hi => empty => fill 0).
    src_ref: VMEM int32 (1, TP)        flat source index per output pixel.
    x_ref:   VMEM (NC, TQ)             source-pixel slab for this Q block.
    o_ref:   VMEM (NC, TP)             output tile (written at last Q step).
    acc_ref: VMEM f32 (NC, TP)         accumulator scratch.
    """
    i = pl.program_id(0)
    k = pl.program_id(1)
    nk = pl.num_programs(1)

    @pl.when(k == 0)
    def _():
        acc_ref[...] = jnp.zeros_like(acc_ref)

    # Cheap scalar test against SMEM metadata; non-contributing blocks skip
    # the (TQ, TP) compare and the MXU matmul entirely.
    hit = (k >= qlo_ref[i]) & (k <= qhi_ref[i])

    @pl.when(hit)
    def _():
        srcm = src_ref[...] - k * TQ                         # (1, TP) local idx
        q_iota = jax.lax.broadcasted_iota(jnp.int32, (TQ, TP), 0)
        sel = (q_iota == srcm).astype(compute_dtype)         # 0/1 exact in bf16
        acc_ref[...] += jnp.dot(x_ref[...].astype(compute_dtype), sel,
                                preferred_element_type=jnp.float32)

    @pl.when(k == nk - 1)
    def _():
        o_ref[...] = acc_ref[...].astype(o_ref.dtype)


def _pick_tile(n):
    """Largest lane-dense tile (multiple of 128, <= 512) dividing n."""
    for t in (512, 256, 128):
        if n % t == 0:
            return t
    return n


def _apply_source_map(x, src, compute_dtype):
    N, C, H, W = x.shape
    NC, HW = N * C, H * W
    x2d = x.reshape(NC, HW)

    TP = _pick_tile(HW)          # output-pixel tile (lane-dense stores)
    TQ = _pick_tile(HW)          # source-pixel tile (bounds one-hot VMEM)
    n_p = HW // TP
    n_q = HW // TQ

    # Per-P-block inclusive range of Q blocks that can contribute.
    src_blk = src.reshape(n_p, TP)
    big = jnp.int32(jnp.iinfo(jnp.int32).max)
    smin = jnp.min(jnp.where(src_blk >= 0, src_blk, big), axis=1)
    smax = jnp.max(src_blk, axis=1)
    any_valid = smax >= 0
    qlo = jnp.where(any_valid, smin // TQ, jnp.int32(1)).astype(jnp.int32)
    qhi = jnp.where(any_valid, smax // TQ, jnp.int32(0)).astype(jnp.int32)

    kernel = functools.partial(_gather_kernel, TQ=TQ, TP=TP,
                               compute_dtype=compute_dtype)

    xbytes = x.dtype.itemsize
    cbytes = jnp.dtype(compute_dtype).itemsize
    est_vmem = (2 * NC * TQ * xbytes          # double-buffered x blocks
                + 2 * NC * TP * xbytes        # double-buffered out blocks
                + NC * TP * 4                 # f32 accumulator scratch
                + 2 * 2 * TP * 4              # src-map blocks
                + TQ * TP * (4 + cbytes + 1)  # iota + one-hot + mask temps
                + (4 << 20))                  # headroom
    vmem_limit = int(min(64 * 2**20, max(32 * 2**20, est_vmem)))

    cost = pl.CostEstimate(
        flops=2 * NC * HW * HW,               # upper bound (skip not modeled)
        transcendentals=0,
        bytes_accessed=(NC * HW * xbytes * (n_p + 1)
                        + HW * 4 * n_q + 8 * n_p))

    out2d = pl.pallas_call(
        kernel,
        out_shape=jax.ShapeDtypeStruct((NC, HW), x.dtype),
        grid=(n_p, n_q),
        in_specs=[
            pl.BlockSpec(memory_space=pltpu.MemorySpace.SMEM),   # qlo (n_p,)
            pl.BlockSpec(memory_space=pltpu.MemorySpace.SMEM),   # qhi (n_p,)
            pl.BlockSpec((1, TP), lambda i, k: (0, i)),          # src map
            pl.BlockSpec((NC, TQ), lambda i, k: (0, k)),         # image slab
        ],
        out_specs=pl.BlockSpec((NC, TP), lambda i, k: (0, i)),
        scratch_shapes=[pltpu.VMEM((NC, TP), jnp.float32)],
        compiler_params=pltpu.CompilerParams(
            dimension_semantics=("parallel", "arbitrary"),
            vmem_limit_bytes=vmem_limit),
        cost_estimate=cost,
    )(qlo, qhi, src.reshape(1, HW), x2d)

    return out2d.reshape(N, C, H, W)


def semantic_segmentation_train(x, key, degrees=30.0, p_vflip=0.5, p_hflip=0.5,
                                compute_dtype=None):
    """Forward pass of SemanticSegmentationTrain on an NCHW tensor."""
    N, C, H, W = x.shape
    if compute_dtype is None:
        # 0/1 one-hot is exact in bf16, but f32 image values / integer labels
        # > 256 would lose precision: only use bf16 when input is bf16.
        compute_dtype = jnp.bfloat16 if x.dtype == jnp.bfloat16 else jnp.float32

    angle, vflip, hflip = _sample_params(key, degrees, p_vflip, p_hflip)
    src = _source_index_map(angle, vflip, hflip, H, W)
    # ToPureTensor: numerical no-op (just drops the tv_tensor subclass).
    return _apply_source_map(x, src, compute_dtype)


# ---------------------------------------------------------------------------
# Self-test
# ---------------------------------------------------------------------------
def _reference(x, src):
    N, C, H, W = x.shape
    x2 = x.reshape(N * C, H * W)
    g = jnp.take(x2, jnp.maximum(src, 0), axis=1)
    g = jnp.where((src >= 0)[None, :], g, 0.0)
    return g.reshape(N, C, H, W)


if __name__ == "__main__":
    key = jax.random.PRNGKey(0)

    # Small primary shape + one multi-block shape to exercise the Q-reduction,
    # accumulator and block-skip paths.
    for shape in [(2, 4, 16, 16), (1, 3, 32, 32)]:
        key, k_x, k_aug = jax.random.split(key, 3)
        x = jax.random.normal(k_x, shape, dtype=jnp.float32)

        out = semantic_segmentation_train(x, k_aug)
        out = jax.block_until_ready(out)

        assert out.shape == x.shape, (out.shape, x.shape)
        assert out.dtype == x.dtype, out.dtype

        # Pure-JAX reference with the same deterministic parameters.
        _, _, H, W = shape
        angle, vflip, hflip = _sample_params(k_aug, 30.0, 0.5, 0.5)
        src = _source_index_map(angle, vflip, hflip, H, W)
        ref = _reference(x, src)
        err = float(jnp.max(jnp.abs(out - ref)))
        assert err < 5e-2, f"max abs err {err} for shape {shape}"

    print("KERNEL_OK")
</pallas_src>

<mosaic_0001>
module attributes {stable_mosaic.version = 11 : i64} {
  func.func @_gather_kernel(%arg0: i32, %arg1: i32, %arg2: memref<1xi32, #tpu.memory_space<smem>>, %arg3: memref<1xi32, #tpu.memory_space<smem>>, %arg4: memref<1x256xi32, #tpu.memory_space<vmem>>, %arg5: memref<8x256xf32, #tpu.memory_space<vmem>>, %arg6: memref<8x256xf32, #tpu.memory_space<vmem>>, %arg7: memref<8x256xf32, #tpu.memory_space<vmem>>) attributes {dimension_semantics = [#tpu.dimension_semantics<parallel>, #tpu.dimension_semantics<arbitrary>], iteration_bounds = array<i64: 1, 1>, scalar_prefetch = 0 : i64, scratch_operands = 1 : i64, tpu.core_type = #tpu.core_type<tc>, window_params = [{transform_indices = @transform_0, window_bounds = array<i64: 1>}, {transform_indices = @transform_1, window_bounds = array<i64: 1>}, {transform_indices = @transform_2, window_bounds = array<i64: 1, 256>}, {transform_indices = @transform_3, window_bounds = array<i64: 8, 256>}, {transform_indices = @transform_4, window_bounds = array<i64: 8, 256>}]} {
    %c0_i32 = arith.constant 0 : i32
    %0 = arith.cmpi eq, %arg1, %c0_i32 : i32
    %1 = arith.extui %0 : i1 to i32
    %c0_i32_0 = arith.constant 0 : i32
    %2 = arith.cmpi ne, %1, %c0_i32_0 : i32
    scf.if %2 {
      %cst = arith.constant 0.000000e+00 : f32
      %15 = vector.broadcast %cst : f32 to vector<8x256xf32>
      %c0 = arith.constant 0 : index
      %c0_4 = arith.constant 0 : index
      %16 = vector.load %arg7[%c0, %c0_4] : memref<8x256xf32, #tpu.memory_space<vmem>>, vector<8x256xf32>
      tpu.vector_store %arg7[%c0, %c0_4], %15 {strides = array<i32>} : memref<8x256xf32, #tpu.memory_space<vmem>>, vector<8x256xf32>,
    } else {
    }
    %3 = arith.index_cast %arg0 : i32 to index
    %4 = memref.load %arg2[%3] : memref<1xi32, #tpu.memory_space<smem>>
    %5 = arith.cmpi sge, %arg1, %4 : i32
    %6 = arith.index_cast %arg0 : i32 to index
    %7 = memref.load %arg3[%6] : memref<1xi32, #tpu.memory_space<smem>>
    %8 = arith.cmpi sle, %arg1, %7 : i32
    %9 = arith.andi %5, %8 : i1
    %10 = arith.extui %9 : i1 to i32
    %c0_i32_1 = arith.constant 0 : i32
    %11 = arith.cmpi ne, %10, %c0_i32_1 : i32
    scf.if %11 {
      %c0 = arith.constant 0 : index
      %c0_4 = arith.constant 0 : index
      %15 = vector.load %arg4[%c0, %c0_4] : memref<1x256xi32, #tpu.memory_space<vmem>>, vector<1x256xi32>
      %c256_i32 = arith.constant 256 : i32
      %16 = arith.muli %arg1, %c256_i32 : i32
      %17 = vector.broadcast %16 : i32 to vector<1x256xi32>
      %18 = arith.subi %15, %17 : vector<1x256xi32>
      %19 = tpu.iota {dimensions = array<i32: 0>} : vector<256x256xi32>
      %20 = vector.broadcast %18 : vector<1x256xi32> to vector<256x256xi32>
      %21 = arith.cmpi eq, %19, %20 : vector<256x256xi32>
      %22 = arith.extui %21 : vector<256x256xi1> to vector<256x256xi32>
      %23 = arith.sitofp %22 : vector<256x256xi32> to vector<256x256xf32>
      %c0_5 = arith.constant 0 : index
      %c0_6 = arith.constant 0 : index
      %24 = vector.load %arg7[%c0_5, %c0_6] : memref<8x256xf32, #tpu.memory_space<vmem>>, vector<8x256xf32>
      %c0_7 = arith.constant 0 : index
      %c0_8 = arith.constant 0 : index
      %25 = vector.load %arg5[%c0_7, %c0_8] : memref<8x256xf32, #tpu.memory_space<vmem>>, vector<8x256xf32>
      %cst = arith.constant dense<0.000000e+00> : vector<8x256xf32>
      %26 = tpu.matmul %25, %23, %cst {dimension_numbers = #tpu.dot_dimension_numbers<[1], [0], [0], [1], [0, 0, 1, 1], [], []>} : vector<8x256xf32>, vector<256x256xf32>, vector<8x256xf32> -> vector<8x256xf32>
      %27 = arith.addf %24, %26 : vector<8x256xf32>
      %c0_9 = arith.constant 0 : index
      %c0_10 = arith.constant 0 : index
      %28 = vector.load %arg7[%c0_9, %c0_10] : memref<8x256xf32, #tpu.memory_space<vmem>>, vector<8x256xf32>
      tpu.vector_store %arg7[%c0_9, %c0_10], %27 {strides = array<i32>} : memref<8x256xf32, #tpu.memory_space<vmem>>, vector<8x256xf32>,
    } else {
    }
    %c0_i32_2 = arith.constant 0 : i32
    %12 = arith.cmpi eq, %arg1, %c0_i32_2 : i32
    %13 = arith.extui %12 : i1 to i32
    %c0_i32_3 = arith.constant 0 : i32
    %14 = arith.cmpi ne, %13, %c0_i32_3 : i32
    scf.if %14 {
      %c0 = arith.constant 0 : index
      %c0_4 = arith.constant 0 : index
      %15 = vector.load %arg7[%c0, %c0_4] : memref<8x256xf32, #tpu.memory_space<vmem>>, vector<8x256xf32>
      %c0_5 = arith.constant 0 : index
      %c0_6 = arith.constant 0 : index
      %16 = vector.load %arg6[%c0_5, %c0_6] : memref<8x256xf32, #tpu.memory_space<vmem>>, vector<8x256xf32>
      tpu.vector_store %arg6[%c0_5, %c0_6], %15 {strides = array<i32>} : memref<8x256xf32, #tpu.memory_space<vmem>>, vector<8x256xf32>,
    } else {
    }
    return
  }
  func.func @transform_0(%arg0: i32, %arg1: i32) -> i32 {
    %c0_i32 = arith.constant 0 : i32
    %c0_i32_0 = arith.constant 0 : i32
    return %c0_i32 : i32
  }
  func.func @transform_1(%arg0: i32, %arg1: i32) -> i32 {
    %c0_i32 = arith.constant 0 : i32
    %c0_i32_0 = arith.constant 0 : i32
    return %c0_i32 : i32
  }
  func.func @transform_2(%arg0: i32, %arg1: i32) -> (i32, i32) {
    %c0_i32 = arith.constant 0 : i32
    %c0_i32_0 = arith.constant 0 : i32
    return %c0_i32, %arg0 : i32, i32
  }
  func.func @transform_3(%arg0: i32, %arg1: i32) -> (i32, i32) {
    %c0_i32 = arith.constant 0 : i32
    %c0_i32_0 = arith.constant 0 : i32
    return %c0_i32, %arg1 : i32, i32
  }
  func.func @transform_4(%arg0: i32, %arg1: i32) -> (i32, i32) {
    %c0_i32 = arith.constant 0 : i32
    %c0_i32_0 = arith.constant 0 : i32
    return %c0_i32, %arg0 : i32, i32
  }
}

</mosaic_0001>

<bundles_post_ra>
// kernel: tpu_custom_call.1
= control target key start
LH: loop header
LB: loop body
LE: loop exit
PB: predicated region body
PF: predicated region fallthrough
CT: control target
= control target key end

     0   :  { %11 = vsyncpa [#allocation6], 0  ;;  %s829_s0 = inlined_call_operand.<no memory space> [shape: s32[1], index: 0, kind: input, shape index: {}]   ;;  %s830_s1 = inlined_call_operand.<no memory space> [shape: s32[1], index: 1, kind: input, shape index: {}]   ;;  %s831_s2 = inlined_call_operand.vmem [shape: s32[1,256], index: 2, kind: input, shape index: {}]   ;;  %s832_s3 = inlined_call_operand.hbm [shape: f32[8,256], index: 3, kind: input, shape index: {}]   ;;  %s833_s4 = inlined_call_operand.hbm [shape: f32[8,256], index: 4, kind: output, shape index: {}]  }
   0x1   :  { %12 = vsyncpa [#allocation7], 0  ;;  %s630_s15 = smov [#allocation5]   ;;  %s582_s19 = scalar_lea.hbm %s832_s3, 256 }
   0x2   :  { %s25_s16 = sshll.u32 %s630_s15, 4  ;;  %p583_p0 = scmp.ne.s32.totalorder %s832_s3, %s582_s19  ;;  %s26_s16 = int_to_ptr.vmem [resolvable:$true] %s25_s16 }
   0x3   :  { %p586_p1 = scmp.lt.u32.totalorder %s582_s19, %s832_s3 }
   0x5   :  { %p588_p2 = pnand %p586_p1, %p583_p0 }
   0x7   :  { %591 = shalt.err (!%p588_p2)
}
   0x8   :  { %s592_s24 = scalar_lea.vmem %s26_s16, 256  ;;  %p597_p4 = scmp.lt.s32.totalorder %s26_s16, %s26_s16 }
   0x9   :  { %p593_p3 = scmp.ne.s32.totalorder %s26_s16, %s592_s24  ;;  %p598_p5 = scmp.lt.s32.totalorder %s592_s24, %s592_s24 }
   0xb   :  { %p599_p6 = por %p598_p5, %p597_p4 }
   0xd   :  { %p600_p7 = pnand %p599_p6, %p593_p3 }
   0xf   :  { %603 = shalt.err (!%p600_p7)
}
  0x10   :  { %28 = dma.hbm_to_vmem [thread:$0]  %s832_s3, 256, %s26_s16, [#allocation6]  }
  0x11   :  { %626 = dma.done.wait [#allocation6], 256  }
  0x12   :  { %627 = vsyncadd [#allocation6], 4294967040  ;;  %p384_p8 = scmp.le.s32.totalorder %s829_s0, 0  ;;  %p385_p9 = scmp.ge.s32.totalorder %s830_s1, 0  ;;  %v631_v0 = vmov 0.0  }
  0x13   :  { %36 = vst [vmem:[#allocation2] sm:$0xff] %v631_v0  ;;  %37 = vst [vmem:[#allocation2 + $0x8] sm:$0xff] %v631_v0 }
  0x14   :  { %p42_p10 = pnand %p385_p9, %p384_p8 }
  0x15   :  { %v50_v1 = vlaneseq (!%p42_p10)  ;;  %v286_v2 = vld [vmem:[#allocation5 + $0x8] sm:$0xff] (!%p42_p10)  ;;  %v46_v4 = vld [vmem:[%s831_s2] sm:$0x3] (!%p42_p10)  ;;  %v632_v14 = vmov (!%p42_p10), 1.0|1.0   ;;  %v285_v41 = vld [vmem:[#allocation5] sm:$0xff] (!%p42_p10) }
  0x16   :  { %45 = sbr.rel (%p42_p10) target bundleno = 311 (0x137), region = 29  ;;  %351 = vmatprep.mubr.f32.mxu0 (!%p42_p10), %v286_v2 }
  0x17   :  { %v677_v3 = vshrl.u32 (!%p42_p10), %v50_v1, 7 }
  0x19   :  { %v52_v5 = vadd.s32 (!%p42_p10), 8, %v677_v3  ;;  %v89_v6 = vsub.s32 (!%p42_p10), 1, %v677_v3  ;;  %v85_v7 = vsub.s32 (!%p42_p10), 0, %v677_v3  ;;  %v53_v8 = vadd.s32 (!%p42_p10), 16, %v677_v3 }
  0x1a   :  { %v54_v9 = vadd.s32 (!%p42_p10), 24, %v677_v3  ;;  %v55_v12 = vadd.s32 (!%p42_p10), 32, %v677_v3  ;;  %v56_v13 = vadd.s32 (!%p42_p10), 40, %v677_v3  ;;  %v57_v15 = vadd.s32 (!%p42_p10), 48, %v677_v3  ;;  %v283_v42 = vld [vmem:[#allocation2] sm:$0xff] (!%p42_p10)  ;;  %v284_v43 = vld [vmem:[#allocation2 + $0x8] sm:$0xff] (!%p42_p10) }
  0x1b   :  { %v687_v10 = vrot.slane (!%p42_p10), %v46_v4, %v89_v6  ;;  %v689_v11 = vrot.slane (!%p42_p10), %v46_v4, %v85_v7  ;;  %v58_v16 = vadd.s32 (!%p42_p10), 56, %v677_v3  ;;  %v59_v17 = vadd.s32 (!%p42_p10), 64, %v677_v3 }
  0x1c   :  { %v60_v18 = vadd.s32 (!%p42_p10), 72, %v677_v3  ;;  %v61_v19 = vadd.s32 (!%p42_p10), 80, %v677_v3  ;;  %v62_v20 = vadd.s32 (!%p42_p10), 88, %v677_v3  ;;  %v63_v21 = vadd.s32 (!%p42_p10), 96, %v677_v3 }
  0x1d   :  { %vm92_vm0 = vcmp.eq.s32.totalorder %v677_v3, %v687_v10  ;;  %vm94_vm1 = vcmp.eq.s32.totalorder %v52_v5, %v687_v10  ;;  %vm91_vm2 = vcmp.eq.s32.totalorder %v677_v3, %v689_v11  ;;  %vm93_vm3 = vcmp.eq.s32.totalorder %v52_v5, %v689_v11 }
  0x1e   :  { %vm514_vm4 = vmpackc.low %vm94_vm1, %vm92_vm0  ;;  %vm96_vm5 = vcmp.eq.s32.totalorder %v53_v8, %v687_v10  ;;  %vm98_vm6 = vcmp.eq.s32.totalorder %v54_v9, %v687_v10  ;;  %vm95_vm7 = vcmp.eq.s32.totalorder %v53_v8, %v689_v11  ;;  %vm97_vm8 = vcmp.eq.s32.totalorder %v54_v9, %v689_v11 }
  0x1f   :  { %515 = vmatprep.subr.msk.bf16.mxu0 %vm514_vm4, %v632_v14  ;;  %vm516_vm9 = vmpackc.low %vm93_vm3, %vm91_vm2  ;;  %vm100_vm10 = vcmp.eq.s32.totalorder %v55_v12, %v687_v10  ;;  %vm102_vm11 = vcmp.eq.s32.totalorder %v56_v13, %v687_v10  ;;  %vm99_vm15 = vcmp.eq.s32.totalorder %v55_v12, %v689_v11  ;;  %vm101_vm0 = vcmp.eq.s32.totalorder %v56_v13, %v689_v11 }
  0x20   :  { %517 = vmatpush1.bf16.msk.msra.mxu0 %vm516_vm9, %v632_v14  ;;  %vm518_vm12 = vmpackc.low %vm98_vm6, %vm96_vm5  ;;  %vm104_vm1 = vcmp.eq.s32.totalorder %v57_v15, %v687_v10  ;;  %vm106_vm2 = vcmp.eq.s32.totalorder %v58_v16, %v687_v10  ;;  %vm103_vm5 = vcmp.eq.s32.totalorder %v57_v15, %v689_v11  ;;  %vm105_vm6 = vcmp.eq.s32.totalorder %v58_v16, %v689_v11 }
  0x21   :  { %519 = vmatprep.subr.msk.bf16.mxu0 %vm518_vm12, %v632_v14  ;;  %vm520_vm13 = vmpackc.low %vm97_vm8, %vm95_vm7  ;;  %vm108_vm7 = vcmp.eq.s32.totalorder %v59_v17, %v687_v10  ;;  %vm110_vm8 = vcmp.eq.s32.totalorder %v60_v18, %v687_v10  ;;  %vm109_vm12 = vcmp.eq.s32.totalorder %v60_v18, %v689_v11  ;;  %v64_v22 = vadd.s32 104, %v677_v3 }
  0x22   :  { %vm522_vm14 = vmpackc.low %vm102_vm11, %vm100_vm10  ;;  %vm107_vm11 = vcmp.eq.s32.totalorder %v59_v17, %v689_v11  ;;  %v65_v23 = vadd.s32 112, %v677_v3  ;;  %v66_v24 = vadd.s32 120, %v677_v3  ;;  %v67_v25 = vadd.s32 128, %v677_v3 }
  0x23   :  { %vm524_vm3 = vmpackc.low %vm101_vm0, %vm99_vm15  ;;  %v68_v26 = vadd.s32 136, %v677_v3  ;;  %v69_v27 = vadd.s32 144, %v677_v3  ;;  %v70_v28 = vadd.s32 152, %v677_v3  ;;  %v71_v29 = vadd.s32 160, %v677_v3 }
  0x24   :  { %521 = vmatpush1.bf16.msk.msra.mxu0 %vm520_vm13, %v632_v14  ;;  %vm526_vm4 = vmpackc.low %vm106_vm2, %vm104_vm1  ;;  %vm112_vm13 = vcmp.eq.s32.totalorder %v61_v19, %v687_v10  ;;  %vm111_vm1 = vcmp.eq.s32.totalorder %v61_v19, %v689_v11  ;;  %vm113_vm2 = vcmp.eq.s32.totalorder %v62_v20, %v689_v11  ;;  %v72_v30 = vadd.s32 168, %v677_v3 }
  0x25   :  { %523 = vmatprep.subr.msk.bf16.mxu0 %vm522_vm14, %v632_v14  ;;  %vm528_vm9 = vmpackc.low %vm105_vm6, %vm103_vm5  ;;  %vm114_vm14 = vcmp.eq.s32.totalorder %v62_v20, %v687_v10  ;;  %v73_v31 = vadd.s32 176, %v677_v3  ;;  %v74_v32 = vadd.s32 184, %v677_v3  ;;  %v75_v33 = vadd.s32 192, %v677_v3 }
  0x26   :  { %vm530_vm10 = vmpackc.low %vm110_vm8, %vm108_vm7  ;;  %vm115_vm7 = vcmp.eq.s32.totalorder %v63_v21, %v689_v11  ;;  %vm117_vm8 = vcmp.eq.s32.totalorder %v64_v22, %v689_v11  ;;  %v76_v34 = vadd.s32 200, %v677_v3  ;;  %v77_v35 = vadd.s32 208, %v677_v3 }
  0x27   :  { %vm532_vm15 = vmpackc.low %vm109_vm12, %vm107_vm11  ;;  %v78_v36 = vadd.s32 216, %v677_v3  ;;  %v79_v37 = vadd.s32 224, %v677_v3  ;;  %v80_v38 = vadd.s32 232, %v677_v3  ;;  %v81_v39 = vadd.s32 240, %v677_v3 }
  0x28   :  { %525 = vmatpush1.bf16.msk.msra.mxu0 %vm524_vm3, %v632_v14  ;;  %vm534_vm0 = vmpackc.low %vm114_vm14, %vm112_vm13  ;;  %vm116_vm3 = vcmp.eq.s32.totalorder %v63_v21, %v687_v10  ;;  %vm119_vm13 = vcmp.eq.s32.totalorder %v65_v23, %v689_v11  ;;  %vm121_vm14 = vcmp.eq.s32.totalorder %v66_v24, %v689_v11  ;;  %v82_v40 = vadd.s32 248, %v677_v3 }
  0x29   :  { %527 = vmatprep.subr.msk.bf16.mxu0 %vm526_vm4, %v632_v14  ;;  %vm118_vm4 = vcmp.eq.s32.totalorder %v64_v22, %v687_v10  ;;  %vm536_vm5 = vmpackc.low %vm113_vm2, %vm111_vm1 }
  0x2a   :  { %vm538_vm6 = vmpackc.low %vm118_vm4, %vm116_vm3  ;;  %vm123_vm3 = vcmp.eq.s32.totalorder %v67_v25, %v689_v11  ;;  %vm125_vm4 = vcmp.eq.s32.totalorder %v68_v26, %v689_v11 }
  0x2b   :  { %vm540_vm11 = vmpackc.low %vm117_vm8, %vm115_vm7 }
  0x2c   :  { %529 = vmatpush1.bf16.msk.msra.mxu0 %vm528_vm9, %v632_v14  ;;  %vm120_vm9 = vcmp.eq.s32.totalorder %v65_v23, %v687_v10  ;;  %vm544_vm1 = vmpackc.low %vm121_vm14, %vm119_vm13 }
  0x2d   :  { %531 = vmatprep.subr.msk.bf16.mxu0 %vm530_vm10, %v632_v14  ;;  %vm122_vm10 = vcmp.eq.s32.totalorder %v66_v24, %v687_v10  ;;  %vm548_vm7 = vmpackc.low %vm125_vm4, %vm123_vm3 }
  0x2e   :  { %vm542_vm12 = vmpackc.low %vm122_vm10, %vm120_vm9  ;;  %vm127_vm9 = vcmp.eq.s32.totalorder %v69_v27, %v689_v11  ;;  %vm129_vm10 = vcmp.eq.s32.totalorder %v70_v28, %v689_v11 }
  0x2f   :  { %vm552_vm13 = vmpackc.low %vm129_vm10, %vm127_vm9 }
  0x30   :  { %533 = vmatpush1.bf16.msk.msra.mxu0 %vm532_vm15, %v632_v14  ;;  %vm124_vm15 = vcmp.eq.s32.totalorder %v67_v25, %v687_v10 }
  0x31   :  { %535 = vmatprep.subr.msk.bf16.mxu0 %vm534_vm0, %v632_v14  ;;  %vm126_vm0 = vcmp.eq.s32.totalorder %v68_v26, %v687_v10 }
  0x32   :  { %vm546_vm2 = vmpackc.low %vm126_vm0, %vm124_vm15  ;;  %vm131_vm15 = vcmp.eq.s32.totalorder %v71_v29, %v689_v11  ;;  %vm133_vm0 = vcmp.eq.s32.totalorder %v72_v30, %v689_v11 }
  0x33   :  { %vm556_vm3 = vmpackc.low %vm133_vm0, %vm131_vm15 }
  0x34   :  { %537 = vmatpush1.bf16.msk.msra.mxu0 %vm536_vm5, %v632_v14  ;;  %vm128_vm5 = vcmp.eq.s32.totalorder %v69_v27, %v687_v10 }
  0x35   :  { %539 = vmatprep.subr.msk.bf16.mxu0 %vm538_vm6, %v632_v14  ;;  %vm130_vm6 = vcmp.eq.s32.totalorder %v70_v28, %v687_v10 }
  0x36   :  { %vm550_vm8 = vmpackc.low %vm130_vm6, %vm128_vm5  ;;  %vm135_vm5 = vcmp.eq.s32.totalorder %v73_v31, %v689_v11  ;;  %vm137_vm6 = vcmp.eq.s32.totalorder %v74_v32, %v689_v11 }
  0x37   :  { %vm560_vm9 = vmpackc.low %vm137_vm6, %vm135_vm5 }
  0x38   :  { %541 = vmatpush1.bf16.msk.msra.mxu0 %vm540_vm11, %v632_v14  ;;  %vm132_vm11 = vcmp.eq.s32.totalorder %v71_v29, %v687_v10 }
  0x39   :  { %543 = vmatprep.subr.msk.bf16.mxu0 %vm542_vm12, %v632_v14  ;;  %vm134_vm12 = vcmp.eq.s32.totalorder %v72_v30, %v687_v10 }
  0x3a   :  { %vm554_vm14 = vmpackc.low %vm134_vm12, %vm132_vm11  ;;  %vm139_vm11 = vcmp.eq.s32.totalorder %v75_v33, %v689_v11  ;;  %vm141_vm12 = vcmp.eq.s32.totalorder %v76_v34, %v689_v11 }
  0x3b   :  { %vm564_vm15 = vmpackc.low %vm141_vm12, %vm139_vm11 }
  0x3c   :  { %545 = vmatpush1.bf16.msk.msra.mxu0 %vm544_vm1, %v632_v14  ;;  %vm136_vm1 = vcmp.eq.s32.totalorder %v73_v31, %v687_v10 }
  0x3d   :  { %547 = vmatprep.subr.msk.bf16.mxu0 %vm546_vm2, %v632_v14  ;;  %vm138_vm2 = vcmp.eq.s32.totalorder %v74_v32, %v687_v10 }
  0x3e   :  { %vm558_vm4 = vmpackc.low %vm138_vm2, %vm136_vm1  ;;  %vm143_vm1 = vcmp.eq.s32.totalorder %v77_v35, %v689_v11  ;;  %vm145_vm2 = vcmp.eq.s32.totalorder %v78_v36, %v689_v11 }
  0x3f   :  { %vm568_vm5 = vmpackc.low %vm145_vm2, %vm143_vm1 }
  0x40   :  { %549 = vmatpush1.bf16.msk.msra.mxu0 %vm548_vm7, %v632_v14  ;;  %vm140_vm7 = vcmp.eq.s32.totalorder %v75_v33, %v687_v10 }
  0x41   :  { %551 = vmatprep.subr.msk.bf16.mxu0 %vm550_vm8, %v632_v14  ;;  %vm142_vm8 = vcmp.eq.s32.totalorder %v76_v34, %v687_v10 }
  0x42   :  { %vm562_vm10 = vmpackc.low %vm142_vm8, %vm140_vm7  ;;  %vm147_vm7 = vcmp.eq.s32.totalorder %v79_v37, %v689_v11  ;;  %vm149_vm8 = vcmp.eq.s32.totalorder %v80_v38, %v689_v11 }
  0x43   :  { %vm572_vm11 = vmpackc.low %vm149_vm8, %vm147_vm7 }
  0x44   :  { %553 = vmatpush1.bf16.msk.msra.mxu0 %vm552_vm13, %v632_v14  ;;  %vm144_vm13 = vcmp.eq.s32.totalorder %v77_v35, %v687_v10 }
  0x45   :  { %555 = vmatprep.subr.msk.bf16.mxu0 %vm554_vm14, %v632_v14  ;;  %vm146_vm14 = vcmp.eq.s32.totalorder %v78_v36, %v687_v10 }
  0x46   :  { %vm566_vm0 = vmpackc.low %vm146_vm14, %vm144_vm13  ;;  %vm151_vm13 = vcmp.eq.s32.totalorder %v81_v39, %v689_v11  ;;  %vm153_vm14 = vcmp.eq.s32.totalorder %v82_v40, %v689_v11 }
  0x48   :  { %557 = vmatpush1.bf16.msk.msra.mxu0 %vm556_vm3, %v632_v14  ;;  %vm148_vm3 = vcmp.eq.s32.totalorder %v79_v37, %v687_v10 }
  0x49   :  { %559 = vmatprep.subr.msk.bf16.mxu0 %vm558_vm4, %v632_v14  ;;  %vm150_vm4 = vcmp.eq.s32.totalorder %v80_v38, %v687_v10 }
  0x4a   :  { %vm570_vm6 = vmpackc.low %vm150_vm4, %vm148_vm3 }
  0x4c   :  { %561 = vmatpush1.bf16.msk.msra.mxu0 %vm560_vm9, %v632_v14  ;;  %vm152_vm9 = vcmp.eq.s32.totalorder %v81_v39, %v687_v10 }
  0x4d   :  { %563 = vmatprep.subr.msk.bf16.mxu0 %vm562_vm10, %v632_v14  ;;  %vm154_vm10 = vcmp.eq.s32.totalorder %v82_v40, %v687_v10 }
  0x4e   :  { %vm574_vm12 = vmpackc.low %vm154_vm10, %vm152_vm9 }
  0x50   :  { %565 = vmatpush1.bf16.msk.msra.mxu0 %vm564_vm15, %v632_v14  ;;  %vm576_vm15 = vmpackc.low %vm153_vm14, %vm151_vm13 }
  0x51   :  { %567 = vmatprep.subr.msk.bf16.mxu0 %vm566_vm0, %v632_v14 }
  0x54   :  { %569 = vmatpush1.bf16.msk.msra.mxu0 %vm568_vm5, %v632_v14 }
  0x55   :  { %571 = vmatprep.subr.msk.bf16.mxu0 %vm570_vm6, %v632_v14 }
  0x58   :  { %573 = vmatpush1.bf16.msk.msra.mxu0 %vm572_vm11, %v632_v14 }
  0x59   :  { %575 = vmatprep.subr.msk.bf16.mxu0 %vm574_vm12, %v632_v14 }
  0x5c   :  { %577 = vmatpush1.bf16.msk.msra.mxu0 %vm576_vm15, %v632_v14 }
  0x5f   :  { %352 = vmatmul.mubr.f32.vlgmr.msra.gmra.mrb[0].mxu0 %v285_v41 }
 0x132   :  { %v353_v44 = vpop.f32.mrb[0].mxu0 }
 0x133   :  { %v358_v45 = vadd.f32 %v353_v44, %v283_v42  ;;  %v355_v46 = vpop.f32.mrb[1].mxu0 }
 0x134   :  { %v359_v47 = vadd.f32 %v355_v46, %v284_v43 }
 0x135   :  { %360 = vst [vmem:[#allocation2] sm:$0xff] %v358_v45 }
 0x136   :  { %361 = vst [vmem:[#allocation2 + $0x8] sm:$0xff] %v359_v47 }
 0x137 PF:  { %s633_s0 = smov [#allocation8]  }
 0x138   :  { %s375_s1 = sshll.u32 %s633_s0, 4  ;;  %s376_s1 = int_to_ptr.vmem [resolvable:$true] %s375_s1 }
 0x139   :  { %s604_s2 = scalar_lea.vmem %s376_s1, 256  ;;  %p609_p12 = scmp.lt.s32.totalorder %s376_s1, %s376_s1 }
 0x13a   :  { %p605_p11 = scmp.ne.s32.totalorder %s376_s1, %s604_s2  ;;  %p610_p13 = scmp.lt.s32.totalorder %s604_s2, %s604_s2 }
 0x13c   :  { %v365_v48 = vld [vmem:[#allocation2] sm:$0xff]  ;;  %p611_p0 = por %p610_p13, %p609_p12 }
 0x13d   :  { %v366_v49 = vld [vmem:[#allocation2 + $0x8] sm:$0xff]  ;;  %367 = vst [vmem:[#allocation8] sm:$0xff] %v365_v48 }
 0x13e   :  { %368 = vst [vmem:[#allocation8 + $0x8] sm:$0xff] %v366_v49  ;;  %p612_p1 = pnand %p611_p0, %p605_p11 }
 0x140   :  { %615 = shalt.err (!%p612_p1)
}
 0x141   :  { %s616_s8 = scalar_lea.hbm %s833_s4, 256 }
 0x142   :  { %p617_p2 = scmp.ne.s32.totalorder %s833_s4, %s616_s8  ;;  %p620_p3 = scmp.lt.u32.totalorder %s616_s8, %s833_s4 }
 0x144   :  { %p622_p4 = pnand %p620_p3, %p617_p2 }
 0x146   :  { %625 = shalt.err (!%p622_p4)
}
 0x147   :  { %378 = dma.vmem_to_hbm [thread:$0]  %s376_s1, 256, %s833_s4, [#allocation7]  }
 0x148   :  { %628 = dma.done.wait [#allocation7], 256  }
 0x149   :  { %629 = vsyncadd [#allocation7], 4294967040 }
 0x14a   :  { %382 = vsyncpa [#allocation6], 1 }
 0x14b   :  { %383 = vsyncpa [#allocation7], 1 }

</bundles_post_ra>
